<compile_context>
chip_gen: v7x
topology: tpu7x:2x2x1
jax: 0.10.0
libtpu: 0.0.40
codegen_flags: <defaults>
</compile_context>

<pallas_src>
import math

import jax
import jax.numpy as jnp
from jax.experimental import pallas as pl
from jax.experimental.pallas import tpu as pltpu


def _round_up(x, m):
    return ((x + m - 1) // m) * m


def mlp_kernel(x_ref, w1_ref, b1_ref, w2_ref, b2_ref, o_ref):
    # Layer 1 on the MXU with f32 accumulation; bias + ReLU in f32 on the VPU.
    h = jnp.dot(x_ref[...], w1_ref[...], preferred_element_type=jnp.float32)
    h = jnp.maximum(h + b1_ref[...], 0.0)
    # Layer 2: operands in the weight dtype (f32 or bf16), f32 accumulation.
    y = jnp.dot(h.astype(w2_ref.dtype), w2_ref[...],
                preferred_element_type=jnp.float32)
    y = y + b2_ref[...]
    # Lane-dense store: o_ref's last dim is g*out_features (a multiple of 128).
    o_ref[...] = y.astype(o_ref.dtype)


def baseline_nn_forward(x, w1, b1, w2, b2, *, tile_b=16384, compute_dtype=None):
    """relu(x @ w1 + b1) @ w2 + b2 via a lane-dense, row-packed Pallas kernel."""
    batch, in_features = x.shape
    hidden = w1.shape[1]
    out_features = w2.shape[1]
    out_dtype = x.dtype

    # Biases stay f32 so the bias/ReLU epilogue is f32 everywhere (v5e-safe).
    b1 = b1.reshape(1, hidden).astype(jnp.float32)
    b2 = b2.reshape(1, out_features).astype(jnp.float32)

    if compute_dtype is not None:
        # Recommended: jnp.bfloat16 on v6e/v7x (halves streamed bytes).
        x = x.astype(compute_dtype)
        w1 = w1.astype(compute_dtype)
        w2 = w2.astype(compute_dtype)

    # ---- Row-packing factor so the kernel output width is a multiple of 128.
    g = 1
    if out_features % 128 != 0:
        g = 128 // math.gcd(out_features, 128)
        if g > 16:          # avoid large FLOP / weight inflation for odd widths
            g = 1

    # TODO(synk): ragged batches (batch % g != 0) still pay one small pad copy
    # of x; the aligned (common) case pays nothing.
    pad = (-batch) % g
    if pad:
        x = jnp.pad(x, ((0, pad), (0, 0)))
    padded_batch = batch + pad
    groups = padded_batch // g

    # Packed view of x (metadata-only reshape) and block-diagonal weights
    # (tiny, constant index_map -> DMA'd once, resident across all grid steps).
    x_p = x.reshape(groups, g * in_features)
    eye = jnp.eye(g, dtype=w1.dtype)
    w1_p = jnp.kron(eye, w1)                       # (g*in,     g*hidden)
    w2_p = jnp.kron(eye, w2)                       # (g*hidden, g*out)
    b1_p = jnp.tile(b1, (1, g))                    # (1, g*hidden), f32
    b2_p = jnp.tile(b2, (1, g))                    # (1, g*out),    f32

    # ---- Batch-tile selection (in packed groups of g rows).
    sub = max(32 // jnp.dtype(x_p.dtype).itemsize,        # 8 f32 / 16 bf16 / 32 int8
              32 // jnp.dtype(out_dtype).itemsize, 8)
    tile_groups = max(sub, _round_up(max(1, tile_b // g), sub))
    if groups > tile_groups:
        tg = tile_groups
    elif groups >= 4 * sub:     # >= 4 steps: megacore split + DMA pipelining
        tg = _round_up(pl.cdiv(groups, 4), sub)
    elif groups >= 2 * sub:     # >= 2 steps: megacore split on v7x
        tg = _round_up(pl.cdiv(groups, 2), sub)
    else:
        tg = groups             # tiny batch: single step (full-dim block)
    num_steps = pl.cdiv(groups, tg)

    flops = 2 * groups * (g * in_features * g * hidden
                          + g * hidden * g * out_features)
    bytes_accessed = (
        x_p.size * jnp.dtype(x_p.dtype).itemsize
        + w1_p.size * jnp.dtype(w1_p.dtype).itemsize
        + w2_p.size * jnp.dtype(w2_p.dtype).itemsize
        + b1_p.size * 4 + b2_p.size * 4
        + groups * g * out_features * jnp.dtype(out_dtype).itemsize)

    out = pl.pallas_call(
        mlp_kernel,
        out_shape=jax.ShapeDtypeStruct((groups, g * out_features), out_dtype),
        grid=(num_steps,),
        in_specs=[
            # Streamed per batch tile (auto double-buffered, lane-dense).
            pl.BlockSpec((tg, g * in_features), lambda i: (i, 0)),
            # Tiny weights/biases: constant index_map -> fetched once, resident.
            # TODO(synk): pipeline_mode=pl.Buffered(1) would drop their second
            # buffer (<1 MiB); left at the default for compile safety.
            pl.BlockSpec((g * in_features, g * hidden), lambda i: (0, 0)),
            pl.BlockSpec((1, g * hidden), lambda i: (0, 0)),
            pl.BlockSpec((g * hidden, g * out_features), lambda i: (0, 0)),
            pl.BlockSpec((1, g * out_features), lambda i: (0, 0)),
        ],
        out_specs=pl.BlockSpec((tg, g * out_features), lambda i: (i, 0)),
        compiler_params=pltpu.CompilerParams(
            dimension_semantics=("parallel",),
            vmem_limit_bytes=32 * 1024 * 1024),
        cost_estimate=pl.CostEstimate(
            flops=flops, transcendentals=0, bytes_accessed=bytes_accessed),
    )(x_p, w1_p, b1_p, w2_p, b2_p)

    # Metadata-only unpack; slice only when the batch was ragged.
    out = out.reshape(padded_batch, out_features)
    if pad:
        out = out[:batch]
    return out


def init_params(key, input_shape, hidden_units, output_shape, dtype=jnp.float32):
    # Deterministic init mimicking nn.Linear's U(-1/sqrt(fan_in), 1/sqrt(fan_in)).
    k1, k2, k3, k4 = jax.random.split(key, 4)
    bound1 = 1.0 / (input_shape ** 0.5)
    bound2 = 1.0 / (hidden_units ** 0.5)
    w1 = jax.random.uniform(k1, (input_shape, hidden_units), dtype, -bound1, bound1)
    b1 = jax.random.uniform(k2, (1, hidden_units), dtype, -bound1, bound1)
    w2 = jax.random.uniform(k3, (hidden_units, output_shape), dtype, -bound2, bound2)
    b2 = jax.random.uniform(k4, (1, output_shape), dtype, -bound2, bound2)
    return w1, b1, w2, b2


if __name__ == "__main__":
    input_shape = 32      # in_features
    hidden_units = 64
    output_shape = 16

    key = jax.random.PRNGKey(0)
    kx, kp = jax.random.split(key)
    w1, b1, w2, b2 = init_params(kp, input_shape, hidden_units, output_shape)

    def ref_fn(xx):
        return jnp.maximum(xx @ w1 + b1, 0.0) @ w2 + b2

    # 1) Small batch: single packed group, single grid step.
    x = jax.random.normal(kx, (8, input_shape), jnp.float32)
    out = jax.block_until_ready(baseline_nn_forward(x, w1, b1, w2, b2))
    assert out.shape == (8, output_shape)
    assert jnp.allclose(out, ref_fn(x), atol=1e-4, rtol=1e-4)

    # 2) Ragged batch: exercises the tiny pad-to-multiple-of-g path.
    x2 = jax.random.normal(jax.random.PRNGKey(1), (13, input_shape), jnp.float32)
    out2 = jax.block_until_ready(baseline_nn_forward(x2, w1, b1, w2, b2))
    assert out2.shape == (13, output_shape)
    assert jnp.allclose(out2, ref_fn(x2), atol=1e-4, rtol=1e-4)

    # 3) Larger batch: multi-step grid with a partial last block (no padding).
    x3 = jax.random.normal(jax.random.PRNGKey(2), (2088, input_shape), jnp.float32)
    out3 = jax.block_until_ready(baseline_nn_forward(x3, w1, b1, w2, b2, tile_b=4096))
    assert out3.shape == (2088, output_shape)
    assert jnp.allclose(out3, ref_fn(x3), atol=1e-4, rtol=1e-4)

    # 4) bf16 streaming path (recommended on v6e/v7x); looser tolerance vs f32 ref.
    x4 = jax.random.normal(jax.random.PRNGKey(3), (256, input_shape), jnp.float32)
    out4 = jax.block_until_ready(
        baseline_nn_forward(x4, w1, b1, w2, b2, compute_dtype=jnp.bfloat16))
    assert out4.shape == (256, output_shape)
    assert jnp.allclose(out4, ref_fn(x4), atol=5e-2, rtol=5e-2)

    print("KERNEL_OK")
</pallas_src>

<mosaic_0001>
module attributes {stable_mosaic.version = 11 : i64} {
  func.func @mlp_kernel(%arg0: i32, %arg1: memref<1x256xf32, #tpu.memory_space<vmem>>, %arg2: memref<256x512xf32, #tpu.memory_space<vmem>>, %arg3: memref<1x512xf32, #tpu.memory_space<vmem>>, %arg4: memref<512x128xf32, #tpu.memory_space<vmem>>, %arg5: memref<1x128xf32, #tpu.memory_space<vmem>>, %arg6: memref<1x128xf32, #tpu.memory_space<vmem>>) attributes {dimension_semantics = [#tpu.dimension_semantics<parallel>], iteration_bounds = array<i64: 1>, scalar_prefetch = 0 : i64, scratch_operands = 0 : i64, tpu.core_type = #tpu.core_type<tc>, window_params = [{transform_indices = @transform_0, window_bounds = array<i64: 1, 256>}, {pipeline_mode = #tpu.pipeline_mode<synchronous>, transform_indices = @transform_1, window_bounds = array<i64: 256, 512>}, {pipeline_mode = #tpu.pipeline_mode<synchronous>, transform_indices = @transform_2, window_bounds = array<i64: 1, 512>}, {pipeline_mode = #tpu.pipeline_mode<synchronous>, transform_indices = @transform_3, window_bounds = array<i64: 512, 128>}, {pipeline_mode = #tpu.pipeline_mode<synchronous>, transform_indices = @transform_4, window_bounds = array<i64: 1, 128>}, {transform_indices = @transform_5, window_bounds = array<i64: 1, 128>}]} {
    %c0 = arith.constant 0 : index
    %c0_0 = arith.constant 0 : index
    %0 = vector.load %arg1[%c0, %c0_0] : memref<1x256xf32, #tpu.memory_space<vmem>>, vector<1x256xf32>
    %c0_1 = arith.constant 0 : index
    %c0_2 = arith.constant 0 : index
    %1 = vector.load %arg2[%c0_1, %c0_2] : memref<256x512xf32, #tpu.memory_space<vmem>>, vector<256x512xf32>
    %cst = arith.constant dense<0.000000e+00> : vector<1x512xf32>
    %2 = tpu.matmul %0, %1, %cst {dimension_numbers = #tpu.dot_dimension_numbers<[1], [0], [0], [1], [0, 0, 1, 1], [], []>} : vector<1x256xf32>, vector<256x512xf32>, vector<1x512xf32> -> vector<1x512xf32>
    %c0_3 = arith.constant 0 : index
    %c0_4 = arith.constant 0 : index
    %3 = vector.load %arg3[%c0_3, %c0_4] : memref<1x512xf32, #tpu.memory_space<vmem>>, vector<1x512xf32>
    %4 = arith.addf %2, %3 : vector<1x512xf32>
    %cst_5 = arith.constant 0.000000e+00 : f32
    %5 = vector.broadcast %cst_5 : f32 to vector<1x512xf32>
    %6 = arith.maximumf %4, %5 : vector<1x512xf32>
    %c0_6 = arith.constant 0 : index
    %c0_7 = arith.constant 0 : index
    %7 = vector.load %arg4[%c0_6, %c0_7] : memref<512x128xf32, #tpu.memory_space<vmem>>, vector<512x128xf32>
    %cst_8 = arith.constant dense<0.000000e+00> : vector<1x128xf32>
    %8 = tpu.matmul %6, %7, %cst_8 {dimension_numbers = #tpu.dot_dimension_numbers<[1], [0], [0], [1], [0, 0, 1, 1], [], []>} : vector<1x512xf32>, vector<512x128xf32>, vector<1x128xf32> -> vector<1x128xf32>
    %c0_9 = arith.constant 0 : index
    %c0_10 = arith.constant 0 : index
    %9 = vector.load %arg5[%c0_9, %c0_10] : memref<1x128xf32, #tpu.memory_space<vmem>>, vector<1x128xf32>
    %10 = arith.addf %8, %9 : vector<1x128xf32>
    %c0_11 = arith.constant 0 : index
    %c0_12 = arith.constant 0 : index
    %11 = vector.load %arg6[%c0_11, %c0_12] : memref<1x128xf32, #tpu.memory_space<vmem>>, vector<1x128xf32>
    tpu.vector_store %arg6[%c0_11, %c0_12], %10 {strides = array<i32>} : memref<1x128xf32, #tpu.memory_space<vmem>>, vector<1x128xf32>,
    return
  }
  func.func @transform_0(%arg0: i32) -> (i32, i32) {
    %c0_i32 = arith.constant 0 : i32
    %c0_i32_0 = arith.constant 0 : i32
    return %arg0, %c0_i32 : i32, i32
  }
  func.func @transform_1(%arg0: i32) -> (i32, i32) {
    %c0_i32 = arith.constant 0 : i32
    %c0_i32_0 = arith.constant 0 : i32
    %c0_i32_1 = arith.constant 0 : i32
    return %c0_i32, %c0_i32_0 : i32, i32
  }
  func.func @transform_2(%arg0: i32) -> (i32, i32) {
    %c0_i32 = arith.constant 0 : i32
    %c0_i32_0 = arith.constant 0 : i32
    %c0_i32_1 = arith.constant 0 : i32
    return %c0_i32, %c0_i32_0 : i32, i32
  }
  func.func @transform_3(%arg0: i32) -> (i32, i32) {
    %c0_i32 = arith.constant 0 : i32
    %c0_i32_0 = arith.constant 0 : i32
    %c0_i32_1 = arith.constant 0 : i32
    return %c0_i32, %c0_i32_0 : i32, i32
  }
  func.func @transform_4(%arg0: i32) -> (i32, i32) {
    %c0_i32 = arith.constant 0 : i32
    %c0_i32_0 = arith.constant 0 : i32
    %c0_i32_1 = arith.constant 0 : i32
    return %c0_i32, %c0_i32_0 : i32, i32
  }
  func.func @transform_5(%arg0: i32) -> (i32, i32) {
    %c0_i32 = arith.constant 0 : i32
    %c0_i32_0 = arith.constant 0 : i32
    return %arg0, %c0_i32 : i32, i32
  }
}

</mosaic_0001>

<bundles_post_ra>
// kernel: tpu_custom_call.1
= control target key start
LH: loop header
LB: loop body
LE: loop exit
PB: predicated region body
PF: predicated region fallthrough
CT: control target
= control target key end

     0   :  { %10 = vsyncpa [#allocation3], 0  ;;  %s1064_s0 = inlined_call_operand.hbm [shape: f32[1,256], index: 0, kind: input, shape index: {}]   ;;  %s1065_s1 = inlined_call_operand.hbm [shape: f32[256,512], index: 1, kind: input, shape index: {}]   ;;  %s1066_s2 = inlined_call_operand.vmem [shape: f32[1,512], index: 2, kind: input, shape index: {}]   ;;  %s1067_s3 = inlined_call_operand.hbm [shape: f32[512,128], index: 3, kind: input, shape index: {}]   ;;  %s1068_s4 = inlined_call_operand.vmem [shape: f32[1,128], index: 4, kind: input, shape index: {}]   ;;  %s1069_s5 = inlined_call_operand.hbm [shape: f32[1,128], index: 5, kind: output, shape index: {}]  }
   0x1   :  { %11 = vsyncpa [#allocation6], 0 }
   0x2   :  { %12 = vsyncpa [#allocation4], 0  ;;  %s954_s18 = smov [#allocation5]   ;;  %s860_s22 = scalar_lea.hbm %s1065_s1, 16384 }
   0x3   :  { %s28_s19 = sshll.u32 %s954_s18, 4  ;;  %p861_p0 = scmp.ne.s32.totalorder %s1065_s1, %s860_s22  ;;  %s29_s19 = int_to_ptr.vmem [resolvable:$true] %s28_s19 }
   0x4   :  { %p864_p1 = scmp.lt.u32.totalorder %s860_s22, %s1065_s1 }
   0x6   :  { %p866_p2 = pnand %p864_p1, %p861_p0 }
   0x8   :  { %869 = shalt.err (!%p866_p2)
}
   0x9   :  { %s870_s27 = scalar_lea.vmem %s29_s19, 16384  ;;  %p875_p4 = scmp.lt.s32.totalorder %s29_s19, %s29_s19 }
   0xa   :  { %p871_p3 = scmp.ne.s32.totalorder %s29_s19, %s870_s27  ;;  %p876_p5 = scmp.lt.s32.totalorder %s870_s27, %s870_s27 }
   0xc   :  { %p877_p6 = por %p876_p5, %p875_p4 }
   0xe   :  { %p878_p7 = pnand %p877_p6, %p871_p3 }
  0x10   :  { %881 = shalt.err (!%p878_p7)
}
  0x11   :  { %s955_s28 = smov 512   ;;  %s956_s29 = smov 32  }
  0x12   :  { %34 = dma.hbm_to_vmem [thread:$0]  %s1065_s1, 16384, %s29_s19, [#allocation6], %s955_s28, %s955_s28, %s956_s29  }
  0x13   :  { %s957_s7 = smov [#allocation2]   ;;  %s958_s9 = smov [#allocation7]  }
  0x14   :  { %s19_s8 = sshll.u32 %s957_s7, 4  ;;  %s42_s10 = sshll.u32 %s958_s9, 4  ;;  %s20_s8 = int_to_ptr.vmem [resolvable:$true] %s19_s8  ;;  %s43_s10 = int_to_ptr.vmem [resolvable:$true] %s42_s10 }
  0x15   :  { %s882_s13 = scalar_lea.hbm %s1064_s0, 32 }
  0x16   :  { %p883_p8 = scmp.ne.s32.totalorder %s1064_s0, %s882_s13  ;;  %p886_p9 = scmp.lt.u32.totalorder %s882_s13, %s1064_s0 }
  0x18   :  { %p888_p10 = pnand %p886_p9, %p883_p8 }
  0x1a   :  { %891 = shalt.err (!%p888_p10)
}
  0x1b   :  { %s892_s1 = scalar_lea.vmem %s20_s8, 32  ;;  %p897_p12 = scmp.lt.s32.totalorder %s20_s8, %s20_s8 }
  0x1c   :  { %p893_p11 = scmp.ne.s32.totalorder %s20_s8, %s892_s1  ;;  %p898_p13 = scmp.lt.s32.totalorder %s892_s1, %s892_s1 }
  0x1e   :  { %p899_p0 = por %p898_p13, %p897_p12 }
  0x20   :  { %p900_p1 = pnand %p899_p0, %p893_p11 }
  0x22   :  { %903 = shalt.err (!%p900_p1)
}
  0x23   :  { %22 = dma.hbm_to_vmem [thread:$0]  %s1064_s0, 32, %s20_s8, [#allocation3]  }
  0x24   :  { %s904_s22 = scalar_lea.hbm %s1067_s3, 8192 }
  0x25   :  { %p905_p2 = scmp.ne.s32.totalorder %s1067_s3, %s904_s22  ;;  %p908_p3 = scmp.lt.u32.totalorder %s904_s22, %s1067_s3 }
  0x27   :  { %p910_p4 = pnand %p908_p3, %p905_p2 }
  0x29   :  { %913 = shalt.err (!%p910_p4)
}
  0x2a   :  { %s914_s27 = scalar_lea.vmem %s43_s10, 8192  ;;  %p919_p6 = scmp.lt.s32.totalorder %s43_s10, %s43_s10 }
  0x2b   :  { %p915_p5 = scmp.ne.s32.totalorder %s43_s10, %s914_s27  ;;  %p920_p7 = scmp.lt.s32.totalorder %s914_s27, %s914_s27 }
  0x2d   :  { %p921_p8 = por %p920_p7, %p919_p6 }
  0x2f   :  { %p922_p9 = pnand %p921_p8, %p915_p5 }
  0x31   :  { %925 = shalt.err (!%p922_p9)
}
  0x32   :  { %s959_s0 = smov 128   ;;  %s960_s28 = smov 8  }
  0x33   :  { %48 = dma.hbm_to_vmem [thread:$0]  %s1067_s3, 8192, %s43_s10, [#allocation6], %s959_s0, %s959_s0, %s960_s28  }
  0x34   :  { %948 = dma.done.wait [#allocation3], 32  }
  0x35   :  { %949 = vsyncadd [#allocation3], 4294967264 }
  0x36   :  { %950 = dma.done.wait [#allocation6], 24576  }
  0x37   :  { %951 = vsyncadd [#allocation6], 4294942720  ;;  %v62_v0 = vld [vmem:[#allocation5 + $0x8] sm:$0xff]  ;;  %v64_v2 = vld [vmem:[#allocation5 + $0x18] sm:$0xff]  ;;  %s961_s8 = smov [#allocation8]  }
  0x38   :  { %v66_v1 = vld [vmem:[#allocation5 + $0x28] sm:$0xff]  ;;  %v68_v4 = vld [vmem:[#allocation5 + $0x38] sm:$0xff]  ;;  %v61_v5 = vld [vmem:[#allocation5] sm:$0xff]  ;;  %s580_s9 = sshll.u32 %s961_s8, 4  ;;  %s581_s9 = int_to_ptr.vmem [resolvable:$true] %s580_s9 }
  0x39   :  { %v660_v3 = vpack.c.bf16 %v66_v1, %v62_v0  ;;  %v65_v6 = vld [vmem:[#allocation5 + $0x20] sm:$0xff]  ;;  %v724_v7 = vpack.c.bf16 %v68_v4, %v64_v2  ;;  %v63_v9 = vld [vmem:[#allocation5 + $0x10] sm:$0xff]  ;;  %v70_v11 = vld [vmem:[#allocation5 + $0x48] sm:$0xff]  ;;  %s926_s10 = scalar_lea.vmem %s581_s9, 16  ;;  %s930_s11 = scalar_lea.vmem %s581_s9, 32 }
  0x3a   :  { %v662_v8 = vpack.c.bf16 %v65_v6, %v61_v5  ;;  %v67_v10 = vld [vmem:[#allocation5 + $0x30] sm:$0xff]  ;;  %v74_v13 = vld [vmem:[#allocation5 + $0x68] sm:$0xff]  ;;  %v72_v14 = vld [vmem:[#allocation5 + $0x58] sm:$0xff]  ;;  %p927_p10 = scmp.ne.s32.totalorder %s581_s9, %s926_s10  ;;  %p931_p11 = scmp.lt.s32.totalorder %s581_s9, %s581_s9 }
  0x3b   :  { %661 = vmatprep.subr.bf16.mxu0 %v660_v3  ;;  %v726_v12 = vpack.c.bf16 %v67_v10, %v63_v9  ;;  %v76_v15 = vld [vmem:[#allocation5 + $0x78] sm:$0xff]  ;;  %725 = vmatprep.subr.bf16.mxu1 %v724_v7  ;;  %v664_v16 = vpack.c.bf16 %v74_v13, %v70_v11  ;;  %v69_v18 = vld [vmem:[#allocation5 + $0x40] sm:$0xff]  ;;  %v71_v20 = vld [vmem:[#allocation5 + $0x50] sm:$0xff]  ;;  %p932_p12 = scmp.lt.s32.totalorder %s930_s11, %s926_s10 }
  0x3c   :  { %663 = vmatpush1.bf16.msra.mxu0 %v662_v8  ;;  %v728_v17 = vpack.c.bf16 %v76_v15, %v72_v14  ;;  %v73_v19 = vld [vmem:[#allocation5 + $0x60] sm:$0xff]  ;;  %v75_v22 = vld [vmem:[#allocation5 + $0x70] sm:$0xff]  ;;  %v78_v23 = vld [vmem:[#allocation5 + $0x88] sm:$0xff] }
  0x3d   :  { %727 = vmatpush1.bf16.msra.mxu1 %v726_v12  ;;  %v666_v21 = vpack.c.bf16 %v73_v19, %v69_v18  ;;  %v82_v24 = vld [vmem:[#allocation5 + $0xa8] sm:$0xff]  ;;  %665 = vmatprep.subr.bf16.mxu0 %v664_v16  ;;  %v730_v25 = vpack.c.bf16 %v75_v22, %v71_v20  ;;  %v80_v27 = vld [vmem:[#allocation5 + $0x98] sm:$0xff]  ;;  %v77_v29 = vld [vmem:[#allocation5 + $0x80] sm:$0xff]  ;;  %p933_p13 = por %p932_p12, %p931_p11 }
  0x3e   :  { %729 = vmatprep.subr.bf16.mxu1 %v728_v17  ;;  %v668_v26 = vpack.c.bf16 %v82_v24, %v78_v23  ;;  %v84_v28 = vld [vmem:[#allocation5 + $0xb8] sm:$0xff]  ;;  %v81_v31 = vld [vmem:[#allocation5 + $0xa0] sm:$0xff]  ;;  %v79_v32 = vld [vmem:[#allocation5 + $0x90] sm:$0xff] }
  0x3f   :  { %v732_v30 = vpack.c.bf16 %v84_v28, %v80_v27  ;;  %v83_v33 = vld [vmem:[#allocation5 + $0xb0] sm:$0xff]  ;;  %v670_v34 = vpack.c.bf16 %v81_v31, %v77_v29  ;;  %v86_v35 = vld [vmem:[#allocation5 + $0xc8] sm:$0xff]  ;;  %v88_v37 = vld [vmem:[#allocation5 + $0xd8] sm:$0xff]  ;;  %p934_p0 = pnand %p933_p13, %p927_p10 }
  0x40   :  { %667 = vmatpush1.bf16.msra.mxu0 %v666_v21  ;;  %v90_v36 = vld [vmem:[#allocation5 + $0xe8] sm:$0xff]  ;;  %v734_v38 = vpack.c.bf16 %v83_v33, %v79_v32  ;;  %v92_v40 = vld [vmem:[#allocation5 + $0xf8] sm:$0xff]  ;;  %v85_v41 = vld [vmem:[#allocation5 + $0xc0] sm:$0xff] }
  0x41   :  { %731 = vmatpush1.bf16.msra.mxu1 %v730_v25  ;;  %669 = vmatprep.subr.bf16.mxu0 %v668_v26  ;;  %v672_v39 = vpack.c.bf16 %v90_v36, %v86_v35  ;;  %v89_v42 = vld [vmem:[#allocation5 + $0xe0] sm:$0xff]  ;;  %v736_v43 = vpack.c.bf16 %v92_v40, %v88_v37  ;;  %v87_v44 = vld [vmem:[#allocation5 + $0xd0] sm:$0xff]  ;;  %v94_v46 = vld [vmem:[#allocation5 + $0x108] sm:$0xff] }
  0x42   :  { %733 = vmatprep.subr.bf16.mxu1 %v732_v30  ;;  %v91_v45 = vld [vmem:[#allocation5 + $0xf0] sm:$0xff]  ;;  %v98_v47 = vld [vmem:[#allocation5 + $0x128] sm:$0xff]  ;;  %v96_v48 = vld [vmem:[#allocation5 + $0x118] sm:$0xff]  ;;  %v674_v50 = vpack.c.bf16 %v89_v42, %v85_v41 }
  0x43   :  { %v100_v49 = vld [vmem:[#allocation5 + $0x138] sm:$0xff]  ;;  %v738_v51 = vpack.c.bf16 %v91_v45, %v87_v44  ;;  %v676_v52 = vpack.c.bf16 %v98_v47, %v94_v46  ;;  %v93_v53 = vld [vmem:[#allocation5 + $0x100] sm:$0xff]  ;;  %v95_v55 = vld [vmem:[#allocation5 + $0x110] sm:$0xff]  ;;  %v191_v46 = vlaneseq }
  0x44   :  { %671 = vmatpush1.bf16.msra.mxu0 %v670_v34  ;;  %v97_v54 = vld [vmem:[#allocation5 + $0x120] sm:$0xff]  ;;  %v740_v56 = vpack.c.bf16 %v100_v49, %v96_v48  ;;  %v99_v57 = vld [vmem:[#allocation5 + $0x130] sm:$0xff]  ;;  %v102_v58 = vld [vmem:[#allocation5 + $0x148] sm:$0xff] }
  0x45   :  { %735 = vmatpush1.bf16.msra.mxu1 %v734_v38  ;;  %673 = vmatprep.subr.bf16.mxu0 %v672_v39  ;;  %v106_v59 = vld [vmem:[#allocation5 + $0x168] sm:$0xff]  ;;  %v104_v60 = vld [vmem:[#allocation5 + $0x158] sm:$0xff]  ;;  %v678_v62 = vpack.c.bf16 %v97_v54, %v93_v53  ;;  %v742_v63 = vpack.c.bf16 %v99_v57, %v95_v55  ;;  %v101_v1 = vld [vmem:[#allocation5 + $0x140] sm:$0xff] }
  0x46   :  { %737 = vmatprep.subr.bf16.mxu1 %v736_v43  ;;  %v108_v61 = vld [vmem:[#allocation5 + $0x178] sm:$0xff]  ;;  %v680_v0 = vpack.c.bf16 %v106_v59, %v102_v58  ;;  %v105_v2 = vld [vmem:[#allocation5 + $0x160] sm:$0xff]  ;;  %v103_v3 = vld [vmem:[#allocation5 + $0x150] sm:$0xff]  ;;  %v1028_v59 = vshrl.u32 %v191_v46, 7 }
  0x47   :  { %v744_v4 = vpack.c.bf16 %v108_v61, %v104_v60  ;;  %v107_v5 = vld [vmem:[#allocation5 + $0x170] sm:$0xff]  ;;  %v110_v6 = vld [vmem:[#allocation5 + $0x188] sm:$0xff]  ;;  %v112_v8 = vld [vmem:[#allocation5 + $0x198] sm:$0xff]  ;;  %v682_v10 = vpack.c.bf16 %v105_v2, %v101_v1 }
  0x48   :  { %675 = vmatpush1.bf16.msra.mxu0 %v674_v50  ;;  %v114_v7 = vld [vmem:[#allocation5 + $0x1a8] sm:$0xff]  ;;  %v116_v9 = vld [vmem:[#allocation5 + $0x1b8] sm:$0xff]  ;;  %v746_v11 = vpack.c.bf16 %v107_v5, %v103_v3  ;;  %v109_v13 = vld [vmem:[#allocation5 + $0x180] sm:$0xff] }
  0x49   :  { %739 = vmatpush1.bf16.msra.mxu1 %v738_v51  ;;  %677 = vmatprep.subr.bf16.mxu0 %v676_v52  ;;  %v684_v12 = vpack.c.bf16 %v114_v7, %v110_v6  ;;  %v113_v14 = vld [vmem:[#allocation5 + $0x1a0] sm:$0xff]  ;;  %v111_v15 = vld [vmem:[#allocation5 + $0x190] sm:$0xff]  ;;  %v748_v16 = vpack.c.bf16 %v116_v9, %v112_v8  ;;  %v118_v18 = vld [vmem:[#allocation5 + $0x1c8] sm:$0xff]  ;;  %v197_v8 = vsub.s32 1, %v1028_v59 }
  0x4a   :  { %741 = vmatprep.subr.bf16.mxu1 %v740_v56  ;;  %v115_v17 = vld [vmem:[#allocation5 + $0x1b0] sm:$0xff]  ;;  %v122_v19 = vld [vmem:[#allocation5 + $0x1e8] sm:$0xff]  ;;  %v120_v20 = vld [vmem:[#allocation5 + $0x1d8] sm:$0xff]  ;;  %v686_v22 = vpack.c.bf16 %v113_v14, %v109_v13 }
  0x4b   :  { %v124_v21 = vld [vmem:[#allocation5 + $0x1f8] sm:$0xff]  ;;  %v750_v23 = vpack.c.bf16 %v115_v17, %v111_v15  ;;  %v688_v24 = vpack.c.bf16 %v122_v19, %v118_v18  ;;  %v117_v25 = vld [vmem:[#allocation5 + $0x1c0] sm:$0xff]  ;;  %v119_v27 = vld [vmem:[#allocation5 + $0x1d0] sm:$0xff] }
  0x4c   :  { %679 = vmatpush1.bf16.msra.mxu0 %v678_v62  ;;  %v121_v26 = vld [vmem:[#allocation5 + $0x1e0] sm:$0xff]  ;;  %v752_v28 = vpack.c.bf16 %v124_v21, %v120_v20  ;;  %v123_v29 = vld [vmem:[#allocation5 + $0x1f0] sm:$0xff]  ;;  %v126_v30 = vld [vmem:[#allocation5 + $0x208] sm:$0xff] }
  0x4d   :  { %743 = vmatpush1.bf16.msra.mxu1 %v742_v63  ;;  %681 = vmatprep.subr.bf16.mxu0 %v680_v0  ;;  %v130_v31 = vld [vmem:[#allocation5 + $0x228] sm:$0xff]  ;;  %v128_v32 = vld [vmem:[#allocation5 + $0x218] sm:$0xff]  ;;  %v690_v34 = vpack.c.bf16 %v121_v26, %v117_v25  ;;  %v754_v35 = vpack.c.bf16 %v123_v29, %v119_v27  ;;  %v125_v37 = vld [vmem:[#allocation5 + $0x200] sm:$0xff] }
  0x4e   :  { %745 = vmatprep.subr.bf16.mxu1 %v744_v4  ;;  %v132_v33 = vld [vmem:[#allocation5 + $0x238] sm:$0xff]  ;;  %v692_v36 = vpack.c.bf16 %v130_v31, %v126_v30  ;;  %v129_v38 = vld [vmem:[#allocation5 + $0x220] sm:$0xff]  ;;  %v127_v39 = vld [vmem:[#allocation5 + $0x210] sm:$0xff] }
  0x4f   :  { %v756_v40 = vpack.c.bf16 %v132_v33, %v128_v32  ;;  %v131_v41 = vld [vmem:[#allocation5 + $0x230] sm:$0xff]  ;;  %v134_v42 = vld [vmem:[#allocation5 + $0x248] sm:$0xff]  ;;  %v136_v44 = vld [vmem:[#allocation5 + $0x258] sm:$0xff]  ;;  %v694_v47 = vpack.c.bf16 %v129_v38, %v125_v37 }
  0x50   :  { %683 = vmatpush1.bf16.msra.mxu0 %v682_v10  ;;  %v138_v43 = vld [vmem:[#allocation5 + $0x268] sm:$0xff]  ;;  %v140_v45 = vld [vmem:[#allocation5 + $0x278] sm:$0xff]  ;;  %v758_v48 = vpack.c.bf16 %v131_v41, %v127_v39  ;;  %v133_v50 = vld [vmem:[#allocation5 + $0x240] sm:$0xff] }
  0x51   :  { %747 = vmatpush1.bf16.msra.mxu1 %v746_v11  ;;  %685 = vmatprep.subr.bf16.mxu0 %v684_v12  ;;  %v696_v49 = vpack.c.bf16 %v138_v43, %v134_v42  ;;  %v137_v51 = vld [vmem:[#allocation5 + $0x260] sm:$0xff]  ;;  %v135_v52 = vld [vmem:[#allocation5 + $0x250] sm:$0xff]  ;;  %v760_v53 = vpack.c.bf16 %v140_v45, %v136_v44  ;;  %v142_v55 = vld [vmem:[#allocation5 + $0x288] sm:$0xff] }
  0x52   :  { %749 = vmatprep.subr.bf16.mxu1 %v748_v16  ;;  %v139_v54 = vld [vmem:[#allocation5 + $0x270] sm:$0xff]  ;;  %v146_v56 = vld [vmem:[#allocation5 + $0x2a8] sm:$0xff]  ;;  %v144_v57 = vld [vmem:[#allocation5 + $0x298] sm:$0xff]  ;;  %v698_v60 = vpack.c.bf16 %v137_v51, %v133_v50 }
  0x53   :  { %v148_v58 = vld [vmem:[#allocation5 + $0x2b8] sm:$0xff]  ;;  %v762_v61 = vpack.c.bf16 %v139_v54, %v135_v52  ;;  %v700_v62 = vpack.c.bf16 %v146_v56, %v142_v55  ;;  %v141_v63 = vld [vmem:[#allocation5 + $0x280] sm:$0xff]  ;;  %v143_v1 = vld [vmem:[#allocation5 + $0x290] sm:$0xff] }
  0x54   :  { %687 = vmatpush1.bf16.msra.mxu0 %v686_v22  ;;  %v145_v0 = vld [vmem:[#allocation5 + $0x2a0] sm:$0xff]  ;;  %v764_v2 = vpack.c.bf16 %v148_v58, %v144_v57  ;;  %v147_v3 = vld [vmem:[#allocation5 + $0x2b0] sm:$0xff]  ;;  %v150_v4 = vld [vmem:[#allocation5 + $0x2c8] sm:$0xff] }
  0x55   :  { %751 = vmatpush1.bf16.msra.mxu1 %v750_v23  ;;  %689 = vmatprep.subr.bf16.mxu0 %v688_v24  ;;  %v154_v5 = vld [vmem:[#allocation5 + $0x2e8] sm:$0xff]  ;;  %v152_v6 = vld [vmem:[#allocation5 + $0x2d8] sm:$0xff]  ;;  %v702_v9 = vpack.c.bf16 %v145_v0, %v141_v63  ;;  %v149_v10 = vld [vmem:[#allocation5 + $0x2c0] sm:$0xff]  ;;  %v766_v11 = vpack.c.bf16 %v147_v3, %v143_v1 }
  0x56   :  { %753 = vmatprep.subr.bf16.mxu1 %v752_v28  ;;  %v156_v7 = vld [vmem:[#allocation5 + $0x2f8] sm:$0xff]  ;;  %v704_v12 = vpack.c.bf16 %v154_v5, %v150_v4  ;;  %v153_v13 = vld [vmem:[#allocation5 + $0x2e0] sm:$0xff]  ;;  %v151_v14 = vld [vmem:[#allocation5 + $0x2d0] sm:$0xff] }
  0x57   :  { %v155_v15 = vld [vmem:[#allocation5 + $0x2f0] sm:$0xff]  ;;  %v768_v16 = vpack.c.bf16 %v156_v7, %v152_v6  ;;  %v158_v17 = vld [vmem:[#allocation5 + $0x308] sm:$0xff]  ;;  %v1031_v19 = vld [vmem:[#allocation2] sm:$0x3]  ;;  %v706_v23 = vpack.c.bf16 %v153_v13, %v149_v10  ;;  %v193_v6 = vsub.s32 0, %v1028_v59 }
  0x58   :  { %691 = vmatpush1.bf16.msra.mxu0 %v690_v34  ;;  %v162_v18 = vld [vmem:[#allocation5 + $0x328] sm:$0xff]  ;;  %v160_v20 = vld [vmem:[#allocation5 + $0x318] sm:$0xff]  ;;  %v198_v22 = vrot.slane %v1031_v19, %v197_v8  ;;  %v770_v24 = vpack.c.bf16 %v155_v15, %v151_v14  ;;  %v157_v26 = vld [vmem:[#allocation5 + $0x300] sm:$0xff] }
  0x59   :  { %755 = vmatpush1.bf16.msra.mxu1 %v754_v35  ;;  %693 = vmatprep.subr.bf16.mxu0 %v692_v36  ;;  %v164_v21 = vld [vmem:[#allocation5 + $0x338] sm:$0xff]  ;;  %v708_v25 = vpack.c.bf16 %v162_v18, %v158_v17  ;;  %v161_v27 = vld [vmem:[#allocation5 + $0x320] sm:$0xff]  ;;  %v159_v28 = vld [vmem:[#allocation5 + $0x310] sm:$0xff] }
  0x5a   :  { %757 = vmatprep.subr.bf16.mxu1 %v756_v40  ;;  %v772_v29 = vpack.c.bf16 %v164_v21, %v160_v20  ;;  %v163_v30 = vld [vmem:[#allocation5 + $0x330] sm:$0xff]  ;;  %v166_v31 = vld [vmem:[#allocation5 + $0x348] sm:$0xff]  ;;  %286 = vmatprep.mubr.f32.mxu0 %v198_v22  ;;  %v168_v33 = vld [vmem:[#allocation5 + $0x358] sm:$0xff]  ;;  %v710_v35 = vpack.c.bf16 %v161_v27, %v157_v26  ;;  %v194_v21 = vrot.slane %v1031_v19, %v193_v6 }
  0x5b   :  { %v170_v32 = vld [vmem:[#allocation5 + $0x368] sm:$0xff]  ;;  %v172_v34 = vld [vmem:[#allocation5 + $0x378] sm:$0xff]  ;;  %357 = vmatprep.mubr.f32.mxu1 %v198_v22  ;;  %v774_v36 = vpack.c.bf16 %v163_v30, %v159_v28  ;;  %v165_v38 = vld [vmem:[#allocation5 + $0x340] sm:$0xff] }
  0x5c   :  { %695 = vmatpush1.bf16.msra.mxu0 %v694_v47  ;;  %v712_v37 = vpack.c.bf16 %v170_v32, %v166_v31  ;;  %v169_v39 = vld [vmem:[#allocation5 + $0x360] sm:$0xff]  ;;  %v167_v40 = vld [vmem:[#allocation5 + $0x350] sm:$0xff]  ;;  %v776_v41 = vpack.c.bf16 %v172_v34, %v168_v33  ;;  %v174_v43 = vld [vmem:[#allocation5 + $0x388] sm:$0xff] }
  0x5d   :  { %759 = vmatpush1.bf16.msra.mxu1 %v758_v48  ;;  %697 = vmatprep.subr.bf16.mxu0 %v696_v49  ;;  %v171_v42 = vld [vmem:[#allocation5 + $0x370] sm:$0xff]  ;;  %v178_v44 = vld [vmem:[#allocation5 + $0x3a8] sm:$0xff]  ;;  %v176_v45 = vld [vmem:[#allocation5 + $0x398] sm:$0xff]  ;;  %v714_v47 = vpack.c.bf16 %v169_v39, %v165_v38 }
  0x5e   :  { %761 = vmatprep.subr.bf16.mxu1 %v760_v53  ;;  %v180_v46 = vld [vmem:[#allocation5 + $0x3b8] sm:$0xff]  ;;  %v778_v48 = vpack.c.bf16 %v171_v42, %v167_v40  ;;  %v716_v49 = vpack.c.bf16 %v178_v44, %v174_v43  ;;  %v173_v50 = vld [vmem:[#allocation5 + $0x380] sm:$0xff]  ;;  %v175_v52 = vld [vmem:[#allocation5 + $0x390] sm:$0xff] }
  0x5f   :  { %v177_v51 = vld [vmem:[#allocation5 + $0x3a0] sm:$0xff]  ;;  %v780_v53 = vpack.c.bf16 %v180_v46, %v176_v45  ;;  %v179_v54 = vld [vmem:[#allocation5 + $0x3b0] sm:$0xff]  ;;  %v182_v55 = vld [vmem:[#allocation5 + $0x3c8] sm:$0xff] }
  0x60   :  { %699 = vmatpush1.bf16.msra.mxu0 %v698_v60  ;;  %v186_v56 = vld [vmem:[#allocation5 + $0x3e8] sm:$0xff]  ;;  %v184_v57 = vld [vmem:[#allocation5 + $0x3d8] sm:$0xff]  ;;  %v718_v60 = vpack.c.bf16 %v177_v51, %v173_v50  ;;  %v181_v63 = vld [vmem:[#allocation5 + $0x3c0] sm:$0xff] }
  0x61   :  { %763 = vmatpush1.bf16.msra.mxu1 %v762_v61  ;;  %701 = vmatprep.subr.bf16.mxu0 %v700_v62  ;;  %v188_v58 = vld [vmem:[#allocation5 + $0x3f8] sm:$0xff]  ;;  %v782_v61 = vpack.c.bf16 %v179_v54, %v175_v52  ;;  %v720_v62 = vpack.c.bf16 %v186_v56, %v182_v55  ;;  %v185_v0 = vld [vmem:[#allocation5 + $0x3e0] sm:$0xff]  ;;  %v183_v1 = vld [vmem:[#allocation5 + $0x3d0] sm:$0xff] }
  0x62   :  { %765 = vmatprep.subr.bf16.mxu1 %v764_v2  ;;  %v784_v2 = vpack.c.bf16 %v188_v58, %v184_v57  ;;  %v187_v3 = vld [vmem:[#allocation5 + $0x3f0] sm:$0xff]  ;;  %v384_v4 = vld [vmem:[#allocation7 + $0x80] sm:$0xff]  ;;  %v385_v5 = vld [vmem:[#allocation7 + $0x88] sm:$0xff]  ;;  %v722_v10 = vpack.c.bf16 %v185_v0, %v181_v63 }
  0x63   :  { %v416_v7 = vld [vmem:[#allocation7 + $0x180] sm:$0xff]  ;;  %v369_v14 = vld [vmem:[#allocation7 + $0x8] sm:$0xff]  ;;  %v386_v18 = vld [vmem:[#allocation7 + $0x90] sm:$0xff] }
  0x64   :  { %703 = vmatpush1.bf16.msra.mxu0 %v702_v9  ;;  %v417_v9 = vld [vmem:[#allocation7 + $0x188] sm:$0xff]  ;;  %v368_v13 = vld [vmem:[#allocation7] sm:$0xff]  ;;  %v387_v20 = vld [vmem:[#allocation7 + $0x98] sm:$0xff] }
  0x65   :  { %767 = vmatpush1.bf16.msra.mxu1 %v766_v11  ;;  %705 = vmatprep.subr.bf16.mxu0 %v704_v12  ;;  %v786_v11 = vpack.c.bf16 %v187_v3, %v183_v1  ;;  %v788_v12 = vpack.c.bf16 %v385_v5, %v384_v4  ;;  %v400_v15 = vld [vmem:[#allocation7 + $0x100] sm:$0xff]  ;;  %v401_v17 = vld [vmem:[#allocation7 + $0x108] sm:$0xff]  ;;  %v418_v22 = vld [vmem:[#allocation7 + $0x190] sm:$0xff]  ;;  %v792_v26 = vpack.c.bf16 %v387_v20, %v386_v18 }
  0x66   :  { %769 = vmatprep.subr.bf16.mxu1 %v768_v16  ;;  %v820_v16 = vpack.c.bf16 %v417_v9, %v416_v7  ;;  %v370_v27 = vld [vmem:[#allocation7 + $0x10] sm:$0xff]  ;;  %v371_v28 = vld [vmem:[#allocation7 + $0x18] sm:$0xff]  ;;  %v388_v32 = vld [vmem:[#allocation7 + $0xa0] sm:$0xff] }
  0x67   :  { %v403_v31 = vld [vmem:[#allocation7 + $0x118] sm:$0xff]  ;;  %v389_v33 = vld [vmem:[#allocation7 + $0xa8] sm:$0xff]  ;;  %v420_v34 = vld [vmem:[#allocation7 + $0x1a0] sm:$0xff]  ;;  %v794_v19 = vpack.c.bf16 %v371_v28, %v370_v27 }
  0x68   :  { %707 = vmatpush1.bf16.msra.mxu0 %v706_v23  ;;  %v419_v23 = vld [vmem:[#allocation7 + $0x198] sm:$0xff]  ;;  %v372_v38 = vld [vmem:[#allocation7 + $0x20] sm:$0xff]  ;;  %v373_v39 = vld [vmem:[#allocation7 + $0x28] sm:$0xff] }
  0x69   :  { %771 = vmatpush1.bf16.msra.mxu1 %v770_v24  ;;  %709 = vmatprep.subr.bf16.mxu0 %v708_v25  ;;  %v790_v24 = vpack.c.bf16 %v369_v14, %v368_v13  ;;  %v822_v25 = vpack.c.bf16 %v401_v17, %v400_v15  ;;  %v824_v30 = vpack.c.bf16 %v419_v23, %v418_v22  ;;  %v404_v40 = vld [vmem:[#allocation7 + $0x120] sm:$0xff]  ;;  %v405_v42 = vld [vmem:[#allocation7 + $0x128] sm:$0xff]  ;;  %v390_v43 = vld [vmem:[#allocation7 + $0xb0] sm:$0xff] }
  0x6a   :  { %773 = vmatprep.subr.bf16.mxu1 %v772_v29  ;;  %v402_v29 = vld [vmem:[#allocation7 + $0x110] sm:$0xff]  ;;  %v391_v44 = vld [vmem:[#allocation7 + $0xb8] sm:$0xff]  ;;  %v392_v55 = vld [vmem:[#allocation7 + $0xc0] sm:$0xff] }
  0x6b   :  { %v422_v45 = vld [vmem:[#allocation7 + $0x1b0] sm:$0xff]  ;;  %v423_v46 = vld [vmem:[#allocation7 + $0x1b8] sm:$0xff]  ;;  %v393_v56 = vld [vmem:[#allocation7 + $0xc8] sm:$0xff] }
  0x6c   :  { %711 = vmatpush1.bf16.msra.mxu0 %v710_v35  ;;  %v421_v35 = vld [vmem:[#allocation7 + $0x1a8] sm:$0xff]  ;;  %v374_v50 = vld [vmem:[#allocation7 + $0x30] sm:$0xff]  ;;  %v375_v51 = vld [vmem:[#allocation7 + $0x38] sm:$0xff] }
  0x6d   :  { %775 = vmatpush1.bf16.msra.mxu1 %v774_v36  ;;  %713 = vmatprep.subr.bf16.mxu0 %v712_v37  ;;  %v826_v36 = vpack.c.bf16 %v403_v31, %v402_v29  ;;  %v796_v37 = vpack.c.bf16 %v389_v33, %v388_v32  ;;  %v406_v52 = vld [vmem:[#allocation7 + $0x130] sm:$0xff]  ;;  %v407_v54 = vld [vmem:[#allocation7 + $0x138] sm:$0xff]  ;;  %v424_v57 = vld [vmem:[#allocation7 + $0x1c0] sm:$0xff] }
  0x6e   :  { %777 = vmatprep.subr.bf16.mxu1 %v776_v41  ;;  %v828_v41 = vpack.c.bf16 %v421_v35, %v420_v34  ;;  %v425_v58 = vld [vmem:[#allocation7 + $0x1c8] sm:$0xff]  ;;  %v376_v63 = vld [vmem:[#allocation7 + $0x40] sm:$0xff]  ;;  %v394_v4 = vld [vmem:[#allocation7 + $0xd0] sm:$0xff] }
  0x6f   :  { %v377_v0 = vld [vmem:[#allocation7 + $0x48] sm:$0xff]  ;;  %v408_v1 = vld [vmem:[#allocation7 + $0x140] sm:$0xff]  ;;  %v395_v5 = vld [vmem:[#allocation7 + $0xd8] sm:$0xff] }
  0x70   :  { %715 = vmatpush1.bf16.msra.mxu0 %v714_v47  ;;  %v798_v47 = vpack.c.bf16 %v373_v39, %v372_v38  ;;  %v409_v3 = vld [vmem:[#allocation7 + $0x148] sm:$0xff]  ;;  %v426_v7 = vld [vmem:[#allocation7 + $0x1d0] sm:$0xff]  ;;  %v427_v9 = vld [vmem:[#allocation7 + $0x1d8] sm:$0xff] }
  0x71   :  { %779 = vmatpush1.bf16.msra.mxu1 %v778_v48  ;;  %717 = vmatprep.subr.bf16.mxu0 %v716_v49  ;;  %v830_v48 = vpack.c.bf16 %v405_v42, %v404_v40  ;;  %v800_v49 = vpack.c.bf16 %v391_v44, %v390_v43  ;;  %v378_v13 = vld [vmem:[#allocation7 + $0x50] sm:$0xff]  ;;  %v379_v14 = vld [vmem:[#allocation7 + $0x58] sm:$0xff]  ;;  %v396_v18 = vld [vmem:[#allocation7 + $0xe0] sm:$0xff] }
  0x72   :  { %781 = vmatprep.subr.bf16.mxu1 %v780_v53  ;;  %v832_v53 = vpack.c.bf16 %v423_v46, %v422_v45  ;;  %v410_v15 = vld [vmem:[#allocation7 + $0x150] sm:$0xff]  ;;  %v411_v17 = vld [vmem:[#allocation7 + $0x158] sm:$0xff]  ;;  %v397_v20 = vld [vmem:[#allocation7 + $0xe8] sm:$0xff]  ;;  %v810_v23 = vpack.c.bf16 %v379_v14, %v378_v13  ;;  %v212_v45 = vsub.s32 2, %v1028_v59  ;;  %v216_v46 = vsub.s32 3, %v1028_v59 }
  0x73   :  { %v429_v22 = vld [vmem:[#allocation7 + $0x1e8] sm:$0xff]  ;;  %v380_v27 = vld [vmem:[#allocation7 + $0x60] sm:$0xff]  ;;  %v398_v33 = vld [vmem:[#allocation7 + $0xf0] sm:$0xff] }
  0x74   :  { %719 = vmatpush1.bf16.msra.mxu0 %v718_v60  ;;  %v802_v60 = vpack.c.bf16 %v375_v51, %v374_v50  ;;  %v381_v28 = vld [vmem:[#allocation7 + $0x68] sm:$0xff]  ;;  %v412_v29 = vld [vmem:[#allocation7 + $0x160] sm:$0xff]  ;;  %v399_v34 = vld [vmem:[#allocation7 + $0xf8] sm:$0xff] }
  0x75   :  { %783 = vmatpush1.bf16.msra.mxu1 %v782_v61  ;;  %721 = vmatprep.subr.bf16.mxu0 %v720_v62  ;;  %v834_v61 = vpack.c.bf16 %v407_v54, %v406_v52  ;;  %v804_v62 = vpack.c.bf16 %v393_v56, %v392_v55  ;;  %v413_v31 = vld [vmem:[#allocation7 + $0x168] sm:$0xff]  ;;  %v430_v35 = vld [vmem:[#allocation7 + $0x1f0] sm:$0xff]  ;;  %v383_v38 = vld [vmem:[#allocation7 + $0x78] sm:$0xff] }
  0x76   :  { %785 = vmatprep.subr.bf16.mxu1 %v784_v2  ;;  %v836_v2 = vpack.c.bf16 %v425_v58, %v424_v57  ;;  %v846_v32 = vpack.c.bf16 %v413_v31, %v412_v29  ;;  %v415_v42 = vld [vmem:[#allocation7 + $0x178] sm:$0xff] }
  0x77   :  { %v189_v44 = vld [vmem:[%s1066_s2] sm:$0xf] }
  0x78   :  { %723 = vmatpush1.bf16.msra.mxu0 %v722_v10  ;;  %v806_v10 = vpack.c.bf16 %v377_v0, %v376_v63  ;;  %v217_v50 = vrot.slane %v189_v44, %v216_v46 }
  0x79   :  { %787 = vmatpush1.bf16.msra.mxu1 %v786_v11  ;;  %789 = vmatprep.subr.bf16.mxu0 %v788_v12  ;;  %v838_v11 = vpack.c.bf16 %v409_v3, %v408_v1  ;;  %v808_v12 = vpack.c.bf16 %v395_v5, %v394_v4 }
  0x7a   :  { %821 = vmatprep.subr.bf16.mxu1 %v820_v16  ;;  %v840_v16 = vpack.c.bf16 %v427_v9, %v426_v7 }
  0x7b   :  { %287 = vmatmul.mubr.f32.vlgmr.msra.gmra.mrb[0].mxu0 %v194_v21 }
  0x7c   :  { %358 = vmatmul.mubr.f32.vlgmr.msra.gmra.mrb[0].mxu1 %v194_v21  ;;  %791 = vmatpush3.bf16.msra.mxu0 %v790_v24  ;;  %v428_v21 = vld [vmem:[#allocation7 + $0x1e0] sm:$0xff]  ;;  %v842_v24 = vpack.c.bf16 %v411_v17, %v410_v15 }
  0x7d   :  { %823 = vmatpush3.bf16.msra.mxu1 %v822_v25  ;;  %793 = vmatprep.subr.bf16.mxu0 %v792_v26  ;;  %v812_v25 = vpack.c.bf16 %v397_v20, %v396_v18  ;;  %v844_v26 = vpack.c.bf16 %v429_v22, %v428_v21 }
  0x7e   :  { %825 = vmatprep.subr.bf16.mxu1 %v824_v30  ;;  %v814_v30 = vpack.c.bf16 %v381_v28, %v380_v27 }
  0x80   :  { %795 = vmatpush3.bf16.msra.mxu0 %v794_v19  ;;  %v816_v19 = vpack.c.bf16 %v399_v34, %v398_v33 }
  0x81   :  { %827 = vmatpush3.bf16.msra.mxu1 %v826_v36  ;;  %797 = vmatprep.subr.bf16.mxu0 %v796_v37  ;;  %v431_v36 = vld [vmem:[#allocation7 + $0x1f8] sm:$0xff]  ;;  %v382_v37 = vld [vmem:[#allocation7 + $0x70] sm:$0xff] }
  0x82   :  { %829 = vmatprep.subr.bf16.mxu1 %v828_v41  ;;  %v848_v39 = vpack.c.bf16 %v431_v36, %v430_v35  ;;  %v818_v40 = vpack.c.bf16 %v383_v38, %v382_v37  ;;  %v414_v41 = vld [vmem:[#allocation7 + $0x170] sm:$0xff] }
  0x83   :  { %v850_v43 = vpack.c.bf16 %v415_v42, %v414_v41 }
  0x84   :  { %799 = vmatpush3.bf16.msra.mxu0 %v798_v47  ;;  %v205_v47 = vrot.slane %v189_v44, %v193_v6 }
  0x85   :  { %831 = vmatpush3.bf16.msra.mxu1 %v830_v48  ;;  %801 = vmatprep.subr.bf16.mxu0 %v800_v49  ;;  %v213_v48 = vrot.slane %v189_v44, %v212_v45  ;;  %v209_v49 = vrot.slane %v189_v44, %v197_v8  ;;  %v432_v8 = vld [vmem:[%s1068_s4] sm:$0x1] }
  0x86   :  { %833 = vmatprep.subr.bf16.mxu1 %v832_v53 }
  0x88   :  { %803 = vmatpush3.bf16.msra.mxu0 %v802_v60 }
  0x89   :  { %835 = vmatpush3.bf16.msra.mxu1 %v834_v61  ;;  %805 = vmatprep.subr.bf16.mxu0 %v804_v62 }
  0x8a   :  { %837 = vmatprep.subr.bf16.mxu1 %v836_v2 }
  0x8c   :  { %807 = vmatpush3.bf16.msra.mxu0 %v806_v10 }
  0x8d   :  { %839 = vmatpush3.bf16.msra.mxu1 %v838_v11  ;;  %809 = vmatprep.subr.bf16.mxu0 %v808_v12 }
  0x8e   :  { %841 = vmatprep.subr.bf16.mxu1 %v840_v16 }
  0x90   :  { %811 = vmatpush3.bf16.msra.mxu0 %v810_v23 }
  0x91   :  { %843 = vmatpush3.bf16.msra.mxu1 %v842_v24  ;;  %813 = vmatprep.subr.bf16.mxu0 %v812_v25 }
  0x92   :  { %845 = vmatprep.subr.bf16.mxu1 %v844_v26 }
  0x94   :  { %815 = vmatpush3.bf16.msra.mxu0 %v814_v30 }
  0x95   :  { %847 = vmatpush3.bf16.msra.mxu1 %v846_v32  ;;  %817 = vmatprep.subr.bf16.mxu0 %v816_v19 }
  0x96   :  { %849 = vmatprep.subr.bf16.mxu1 %v848_v39 }
  0x98   :  { %819 = vmatpush3.bf16.msra.mxu0 %v818_v40 }
  0x99   :  { %851 = vmatpush3.bf16.msra.mxu1 %v850_v43 }
 0x14e   :  { %v288_v51 = vpop.f32.mrb[0].mxu0 }
 0x14f   :  { %v289_v52 = vadd.f32 %v288_v51, %v205_v47  ;;  %v359_v53 = vpop.f32.mrb[0].mxu1  ;;  %v290_v54 = vpop.f32.mrb[1].mxu0 }
 0x150   :  { %v360_v55 = vadd.f32 %v359_v53, %v213_v48  ;;  %v291_v56 = vadd.f32 %v290_v54, %v209_v49  ;;  %v361_v57 = vpop.f32.mrb[1].mxu1 }
 0x151   :  { %v362_v58 = vadd.f32 %v361_v57, %v217_v50  ;;  %v364_v62 = vmax.f32 %v289_v52, 0.0 }
 0x152   :  { %v366_v60 = vmax.f32 %v360_v55, 0.0  ;;  %v365_v61 = vmax.f32 %v291_v56, 0.0 }
 0x153   :  { %v367_v63 = vmax.f32 %v362_v58, 0.0 }
 0x154   :  { %497 = vmatprep.mubr.f32.mxu0 %v365_v61 }
 0x155   :  { %567 = vmatprep.mubr.f32.mxu1 %v367_v63  ;;  %498 = vmatmul.mubr.f32.vlgmr.msra.gmra.mrb[2].mxu0 %v364_v62 }
 0x156   :  { %568 = vmatmul.mubr.f32.vlgmr.msra.gmra.mrb[2].mxu1 %v366_v60 }
 0x228   :  { %v622_v6 = vpop.f32.mrb[2].mxu0 }
 0x229   :  { %v657_v59 = vpop.f32.mrb[2].mxu1  ;;  %v623_v0 = vpop.f32.mrb[3].mxu0 }
 0x22a   :  { %v624_v1 = vadd.f32 %v623_v0, %v622_v6  ;;  %v658_v2 = vpop.f32.mrb[3].mxu1 }
 0x22b   :  { %v659_v3 = vadd.f32 %v658_v2, %v657_v59 }
 0x22c   :  { %v500_v4 = vadd.f32 %v624_v1, %v432_v8 }
 0x22e   :  { %v570_v5 = vadd.f32 %v659_v3, %v500_v4 }
 0x230   :  { %573 = vst [vmem:[#allocation8] sm:$0x1] %v570_v5 }
 0x231   :  { %937 = shalt.err (!%p934_p0)
}
 0x232   :  { %s938_s13 = scalar_lea.hbm %s1069_s5, 16 }
 0x233   :  { %p939_p1 = scmp.ne.s32.totalorder %s1069_s5, %s938_s13  ;;  %p942_p2 = scmp.lt.u32.totalorder %s938_s13, %s1069_s5 }
 0x235   :  { %p944_p3 = pnand %p942_p2, %p939_p1 }
 0x237   :  { %947 = shalt.err (!%p944_p3)
}
 0x238   :  { %583 = dma.vmem_to_hbm [thread:$0]  %s581_s9, 16, %s1069_s5, [#allocation4]  }
 0x239   :  { %952 = dma.done.wait [#allocation4], 16  }
 0x23a   :  { %953 = vsyncadd [#allocation4], 4294967280 }
 0x23b   :  { %587 = vsyncpa [#allocation3], 1 }
 0x23c   :  { %588 = vsyncpa [#allocation6], 1 }
 0x23d   :  { %589 = vsyncpa [#allocation4], 1 }

</bundles_post_ra>
